<compile_context>
chip_gen: v7x
topology: tpu7x:2x2x1
jax: 0.10.0
libtpu: 0.0.40
codegen_flags: <defaults>
</compile_context>

<pallas_src>
import jax
import jax.numpy as jnp
from jax.experimental import pallas as pl
from jax.experimental.pallas import tpu as pltpu

EPS = 1e-5
_ALIGN = 128  # lane width; padding features to this keeps everything aligned


# ------------------------------ kernels -------------------------------------

def bn_prepass_kernel(img_ref, txt_ref, imgn_ref, txtn_ref, zimg_ref, ztxt_ref):
    """One-shot BN pre-pass: bn0/bn1 normalization + analytic bn2 rescale."""

    def norm(x):
        mean = jnp.mean(x, axis=0, keepdims=True)
        xc = x - mean
        var = jnp.mean(xc * xc, axis=0, keepdims=True)      # two-pass, biased
        xn = xc * jax.lax.rsqrt(var + EPS)                   # bn0 / bn1
        # bn2 applied to xn: per-feature mean(xn)==0, var(xn)==var/(var+eps),
        # so bn2 reduces to a per-feature scale (no second reduction pass).
        s = jax.lax.rsqrt(var / (var + EPS) + EPS)
        return xn, xn * s

    img_n, img_n2 = norm(img_ref[...])
    txt_n, txt_n2 = norm(txt_ref[...])
    imgn_ref[...] = img_n.astype(imgn_ref.dtype)
    txtn_ref[...] = txt_n.astype(txtn_ref.dtype)
    zimg_ref[...] = img_n2.astype(zimg_ref.dtype)
    ztxt_ref[...] = txt_n2.astype(ztxt_ref.dtype)


def gmu_matmul_kernel(imgn_ref, txtn_ref, zcat_ref, w_ref, b_ref, out_ref):
    """Per hidden-dim tile: 3 MXU dots + gating.

    w_ref is the fused, tile-major weight tile of shape (2*(I+T), tn) with rows
    [w_h_image (I) | w_h_text (T) | w_z_image (I) | w_z_text (T)].
    b_ref is (3, tn): rows [b_h_image, b_h_text, b_z].
    """
    I = imgn_ref.shape[1]
    T = txtn_ref.shape[1]

    image_h = jnp.tanh(
        jnp.dot(imgn_ref[...], w_ref[:I, :],
                preferred_element_type=jnp.float32) + b_ref[0:1, :])
    text_h = jnp.tanh(
        jnp.dot(txtn_ref[...], w_ref[I:I + T, :],
                preferred_element_type=jnp.float32) + b_ref[1:2, :])
    z = jax.nn.sigmoid(
        jnp.dot(zcat_ref[...], w_ref[I + T:, :],
                preferred_element_type=jnp.float32) + b_ref[2:3, :])

    out_ref[...] = jnp.tanh(z * image_h + (1.0 - z) * text_h)


# ------------------------------ wrapper -------------------------------------

def _vmem_capacity_bytes():
    try:
        info = pltpu.get_tpu_info()
        cap = getattr(info, "vmem_capacity_bytes", None)
        if cap:
            return int(cap)
    except Exception:
        pass
    return 64 * 1024 * 1024  # conservative: v7x per-TC VMEM


def _vmem_bytes_needed(B, I, T, K_all, tn):
    act = 2 * 2 * B * (I + T) * 2          # imgn + txtn + zcat bf16, x2 buffers
    wgt = 2 * K_all * tn * 2               # fused weight tile bf16, x2 buffers
    bias = 2 * 3 * tn * 4                  # fused bias tile f32, x2 buffers
    outb = 2 * B * tn * 4                  # output tile f32, x2 buffers
    return act + wgt + bias + outb


def _pick_tile(H, B, I, T, K_all, budget):
    for tn in (1024, 512, 256, 128):
        if H % tn == 0 and _vmem_bytes_needed(B, I, T, K_all, tn) <= budget:
            return tn
    return H


def _pad_cols(x, mult=_ALIGN):
    pad = (-x.shape[1]) % mult
    return jnp.pad(x, ((0, 0), (0, pad))) if pad else x


def _pad_rows(w, mult=_ALIGN):
    pad = (-w.shape[0]) % mult
    return jnp.pad(w, ((0, pad), (0, 0))) if pad else w


def gmu_forward(text_emb, img_emb, params, *, tn=None):
    B, T = text_emb.shape
    _, I = img_emb.shape
    H = params["b_hi"].shape[-1]

    # Pad feature dims to a lane multiple so all in-kernel slices/stores are
    # aligned. Zero columns normalize to zero and zero weight rows contribute
    # nothing, so results are unchanged.
    Ip = I + ((-I) % _ALIGN)
    Tp = T + ((-T) % _ALIGN)
    K_all = 2 * (Ip + Tp)

    vmem_phys = _vmem_capacity_bytes()
    if tn is None:
        tn = _pick_tile(H, B, Ip, Tp, K_all, int(vmem_phys * 0.7))
    assert H % tn == 0, "hidden size must be divisible by the output tile"
    n_tiles = H // tn

    # ---------------- BN / normalization pre-pass (one-shot) ----------------
    img_f32 = _pad_cols(img_emb.astype(jnp.float32))
    txt_f32 = _pad_cols(text_emb.astype(jnp.float32))
    img_n, txt_n, zimg, ztxt = pl.pallas_call(
        bn_prepass_kernel,
        out_shape=(
            jax.ShapeDtypeStruct((B, Ip), jnp.bfloat16),
            jax.ShapeDtypeStruct((B, Tp), jnp.bfloat16),
            jax.ShapeDtypeStruct((B, Ip), jnp.bfloat16),
            jax.ShapeDtypeStruct((B, Tp), jnp.bfloat16),
        ),
    )(img_f32, txt_f32)
    # Lane-dense concat done outside the kernel (keeps all stores aligned).
    zcat = jnp.concatenate([zimg, ztxt], axis=1)             # (B, Ip+Tp)

    # ------------- fused, tile-major, contiguous bf16 weight slab -----------
    # (In a real model this re-pack happens once at parameter-load time.)
    w_hi = _pad_rows(params["w_hi"])                          # (Ip, H)
    w_ht = _pad_rows(params["w_ht"])                          # (Tp, H)
    wz_img = _pad_rows(params["wz"][:I])                      # (Ip, H)
    wz_txt = _pad_rows(params["wz"][I:])                      # (Tp, H)
    w_all = jnp.concatenate([w_hi, w_ht, wz_img, wz_txt],
                            axis=0).astype(jnp.bfloat16)      # (K_all, H)
    w_tiles = w_all.reshape(K_all, n_tiles, tn).transpose(1, 0, 2)

    b_all = jnp.concatenate(
        [params["b_hi"], params["b_ht"], params["b_z"]],
        axis=0).astype(jnp.float32)                           # (3, H)
    b_tiles = b_all.reshape(3, n_tiles, tn).transpose(1, 0, 2)

    vmem_need = _vmem_bytes_needed(B, Ip, Tp, K_all, tn)
    vmem_limit = min(max(int(vmem_need * 1.25) + (4 << 20), 16 << 20),
                     int(vmem_phys * 0.9))

    cost = pl.CostEstimate(
        flops=4 * B * (Ip + Tp) * H,
        transcendentals=4 * B * H,
        bytes_accessed=(K_all * H * 2 + 3 * H * 4
                        + 2 * B * (Ip + Tp) * 2 + B * H * 4),
    )

    grid_spec = pltpu.PrefetchScalarGridSpec(
        num_scalar_prefetch=0,
        grid=(n_tiles,),
        in_specs=[
            pl.BlockSpec((B, Ip), lambda j: (0, 0)),          # img_n (resident)
            pl.BlockSpec((B, Tp), lambda j: (0, 0)),          # txt_n (resident)
            pl.BlockSpec((B, Ip + Tp), lambda j: (0, 0)),     # zcat  (resident)
            pl.BlockSpec((None, K_all, tn), lambda j: (j, 0, 0)),  # fused W tile
            pl.BlockSpec((None, 3, tn), lambda j: (j, 0, 0)),      # fused b tile
        ],
        out_specs=pl.BlockSpec((B, tn), lambda j: (0, j)),
    )

    return pl.pallas_call(
        gmu_matmul_kernel,
        out_shape=jax.ShapeDtypeStruct((B, H), jnp.float32),
        grid_spec=grid_spec,
        compiler_params=pltpu.CompilerParams(
            dimension_semantics=("parallel",),   # H-tiles independent -> megacore OK
            vmem_limit_bytes=vmem_limit,
        ),
        cost_estimate=cost,
    )(img_n, txt_n, zcat, w_tiles, b_tiles)


# ----------------------------- references -----------------------------------

def _bn_train(x):
    """BatchNorm1d training mode (gamma=1, beta=0), biased variance, two-pass."""
    mean = jnp.mean(x, axis=0, keepdims=True)
    var = jnp.mean((x - mean) * (x - mean), axis=0, keepdims=True)
    return (x - mean) * jax.lax.rsqrt(var + EPS)


def gmu_reference(text_emb, img_emb, params, *, bf16_weights):
    """Pure-JAX reference mirroring the PyTorch graph (explicit bn2 on concat)."""
    wdt = jnp.bfloat16 if bf16_weights else jnp.float32
    adt = jnp.bfloat16 if bf16_weights else jnp.float32
    w_hi = params["w_hi"].astype(wdt)
    w_ht = params["w_ht"].astype(wdt)
    w_z = params["wz"].astype(wdt)

    img_n = _bn_train(img_emb)
    txt_n = _bn_train(text_emb)
    image_h = jnp.tanh(
        jnp.dot(img_n.astype(adt), w_hi, preferred_element_type=jnp.float32)
        + params["b_hi"])
    text_h = jnp.tanh(
        jnp.dot(txt_n.astype(adt), w_ht, preferred_element_type=jnp.float32)
        + params["b_ht"])
    concat = _bn_train(jnp.concatenate([img_n, txt_n], axis=1))
    z = jax.nn.sigmoid(
        jnp.dot(concat.astype(adt), w_z, preferred_element_type=jnp.float32)
        + params["b_z"])
    return jnp.tanh(z * image_h + (1.0 - z) * text_h)


def init_params(key, text_dim, img_dim, hidden):
    ks = jax.random.split(key, 6)

    def lin(kw, kb, fan_in, fan_out):
        bound = 1.0 / jnp.sqrt(fan_in)
        w = jax.random.uniform(kw, (fan_in, fan_out), jnp.float32, -bound, bound)
        b = jax.random.uniform(kb, (1, fan_out), jnp.float32, -bound, bound)
        return w, b

    w_hi, b_hi = lin(ks[0], ks[1], img_dim, hidden)
    w_ht, b_ht = lin(ks[2], ks[3], text_dim, hidden)
    wz, b_z = lin(ks[4], ks[5], img_dim + text_dim, hidden)   # image rows first
    return {"w_hi": w_hi, "b_hi": b_hi,
            "w_ht": w_ht, "b_ht": b_ht,
            "wz": wz, "b_z": b_z}


def _check_case(key, B, T, I, H, *, forced_tn=None):
    k_txt, k_img, k_par = jax.random.split(key, 3)
    text_emb = jax.random.normal(k_txt, (B, T), jnp.float32)
    img_emb = jax.random.normal(k_img, (B, I), jnp.float32)
    params = init_params(k_par, T, I, H)

    out = gmu_forward(text_emb, img_emb, params, tn=forced_tn)
    out = jax.block_until_ready(out)
    assert out.shape == (B, H)

    ref_bf16 = gmu_reference(text_emb, img_emb, params, bf16_weights=True)
    ref_f32 = gmu_reference(text_emb, img_emb, params, bf16_weights=False)
    assert jnp.allclose(out, ref_bf16, atol=5e-3, rtol=5e-3), \
        "mismatch vs matched-precision JAX reference"
    assert jnp.allclose(out, ref_f32, atol=5e-2, rtol=5e-2), \
        "mismatch vs f32 JAX reference"
    return out


if __name__ == "__main__":
    key = jax.random.PRNGKey(0)
    k0, k1 = jax.random.split(key)

    # Aligned small shapes; auto tile (single tile) and forced multi-tile grid
    # must agree.
    out_auto = _check_case(k0, B=8, T=128, I=256, H=512)
    out_tiled = _check_case(k0, B=8, T=128, I=256, H=512, forced_tn=128)
    assert jnp.allclose(out_auto, out_tiled, atol=1e-5, rtol=1e-5), \
        "auto-tile vs forced-tile mismatch"

    # Unaligned feature dims exercise the padding path.
    _check_case(k1, B=4, T=120, I=200, H=256)

    print("KERNEL_OK")
</pallas_src>

<mosaic_0001>
module attributes {stable_mosaic.version = 11 : i64} {
  func.func @bn_prepass_kernel(%arg0: memref<8x256xf32, #tpu.memory_space<vmem>>, %arg1: memref<8x128xf32, #tpu.memory_space<vmem>>, %arg2: memref<8x256xbf16, #tpu.memory_space<vmem>>, %arg3: memref<8x128xbf16, #tpu.memory_space<vmem>>, %arg4: memref<8x256xbf16, #tpu.memory_space<vmem>>, %arg5: memref<8x128xbf16, #tpu.memory_space<vmem>>) attributes {dimension_semantics = [], scalar_prefetch = 0 : i64, scratch_operands = 0 : i64, tpu.core_type = #tpu.core_type<tc>} {
    %c0 = arith.constant 0 : index
    %c0_0 = arith.constant 0 : index
    %0 = vector.load %arg0[%c0, %c0_0] : memref<8x256xf32, #tpu.memory_space<vmem>>, vector<8x256xf32>
    %cst = arith.constant dense<0.000000e+00> : vector<256xf32>
    %1 = vector.multi_reduction <add>, %0, %cst [0] : vector<8x256xf32> to vector<256xf32>
    %2 = vector.shape_cast %1 : vector<256xf32> to vector<1x256xf32>
    %cst_1 = arith.constant 8.000000e+00 : f32
    %3 = vector.broadcast %cst_1 : f32 to vector<1x256xf32>
    %4 = arith.divf %2, %3 : vector<1x256xf32>
    %5 = vector.broadcast %4 : vector<1x256xf32> to vector<8x256xf32>
    %6 = arith.subf %0, %5 : vector<8x256xf32>
    %7 = arith.mulf %6, %6 : vector<8x256xf32>
    %cst_2 = arith.constant dense<0.000000e+00> : vector<256xf32>
    %8 = vector.multi_reduction <add>, %7, %cst_2 [0] : vector<8x256xf32> to vector<256xf32>
    %9 = vector.shape_cast %8 : vector<256xf32> to vector<1x256xf32>
    %cst_3 = arith.constant 8.000000e+00 : f32
    %10 = vector.broadcast %cst_3 : f32 to vector<1x256xf32>
    %11 = arith.divf %9, %10 : vector<1x256xf32>
    %cst_4 = arith.constant 9.99999974E-6 : f32
    %12 = vector.broadcast %cst_4 : f32 to vector<1x256xf32>
    %13 = arith.addf %11, %12 : vector<1x256xf32>
    %14 = math.rsqrt %13 : vector<1x256xf32>
    %15 = vector.broadcast %14 : vector<1x256xf32> to vector<8x256xf32>
    %16 = arith.mulf %6, %15 : vector<8x256xf32>
    %cst_5 = arith.constant 9.99999974E-6 : f32
    %17 = vector.broadcast %cst_5 : f32 to vector<1x256xf32>
    %18 = arith.addf %11, %17 : vector<1x256xf32>
    %19 = arith.divf %11, %18 : vector<1x256xf32>
    %cst_6 = arith.constant 9.99999974E-6 : f32
    %20 = vector.broadcast %cst_6 : f32 to vector<1x256xf32>
    %21 = arith.addf %19, %20 : vector<1x256xf32>
    %22 = math.rsqrt %21 : vector<1x256xf32>
    %23 = vector.broadcast %22 : vector<1x256xf32> to vector<8x256xf32>
    %24 = arith.mulf %16, %23 : vector<8x256xf32>
    %c0_7 = arith.constant 0 : index
    %c0_8 = arith.constant 0 : index
    %25 = vector.load %arg1[%c0_7, %c0_8] : memref<8x128xf32, #tpu.memory_space<vmem>>, vector<8x128xf32>
    %cst_9 = arith.constant dense<0.000000e+00> : vector<128xf32>
    %26 = vector.multi_reduction <add>, %25, %cst_9 [0] : vector<8x128xf32> to vector<128xf32>
    %27 = vector.shape_cast %26 : vector<128xf32> to vector<1x128xf32>
    %cst_10 = arith.constant 8.000000e+00 : f32
    %28 = vector.broadcast %cst_10 : f32 to vector<1x128xf32>
    %29 = arith.divf %27, %28 : vector<1x128xf32>
    %30 = vector.broadcast %29 : vector<1x128xf32> to vector<8x128xf32>
    %31 = arith.subf %25, %30 : vector<8x128xf32>
    %32 = arith.mulf %31, %31 : vector<8x128xf32>
    %cst_11 = arith.constant dense<0.000000e+00> : vector<128xf32>
    %33 = vector.multi_reduction <add>, %32, %cst_11 [0] : vector<8x128xf32> to vector<128xf32>
    %34 = vector.shape_cast %33 : vector<128xf32> to vector<1x128xf32>
    %cst_12 = arith.constant 8.000000e+00 : f32
    %35 = vector.broadcast %cst_12 : f32 to vector<1x128xf32>
    %36 = arith.divf %34, %35 : vector<1x128xf32>
    %cst_13 = arith.constant 9.99999974E-6 : f32
    %37 = vector.broadcast %cst_13 : f32 to vector<1x128xf32>
    %38 = arith.addf %36, %37 : vector<1x128xf32>
    %39 = math.rsqrt %38 : vector<1x128xf32>
    %40 = vector.broadcast %39 : vector<1x128xf32> to vector<8x128xf32>
    %41 = arith.mulf %31, %40 : vector<8x128xf32>
    %cst_14 = arith.constant 9.99999974E-6 : f32
    %42 = vector.broadcast %cst_14 : f32 to vector<1x128xf32>
    %43 = arith.addf %36, %42 : vector<1x128xf32>
    %44 = arith.divf %36, %43 : vector<1x128xf32>
    %cst_15 = arith.constant 9.99999974E-6 : f32
    %45 = vector.broadcast %cst_15 : f32 to vector<1x128xf32>
    %46 = arith.addf %44, %45 : vector<1x128xf32>
    %47 = math.rsqrt %46 : vector<1x128xf32>
    %48 = vector.broadcast %47 : vector<1x128xf32> to vector<8x128xf32>
    %49 = arith.mulf %41, %48 : vector<8x128xf32>
    %50 = arith.truncf %16 : vector<8x256xf32> to vector<8x256xbf16>
    %c0_16 = arith.constant 0 : index
    %c0_17 = arith.constant 0 : index
    %51 = vector.load %arg2[%c0_16, %c0_17] : memref<8x256xbf16, #tpu.memory_space<vmem>>, vector<8x256xbf16>
    tpu.vector_store %arg2[%c0_16, %c0_17], %50 {strides = array<i32>} : memref<8x256xbf16, #tpu.memory_space<vmem>>, vector<8x256xbf16>,
    %52 = arith.truncf %41 : vector<8x128xf32> to vector<8x128xbf16>
    %c0_18 = arith.constant 0 : index
    %c0_19 = arith.constant 0 : index
    %53 = vector.load %arg3[%c0_18, %c0_19] : memref<8x128xbf16, #tpu.memory_space<vmem>>, vector<8x128xbf16>
    tpu.vector_store %arg3[%c0_18, %c0_19], %52 {strides = array<i32>} : memref<8x128xbf16, #tpu.memory_space<vmem>>, vector<8x128xbf16>,
    %54 = arith.truncf %24 : vector<8x256xf32> to vector<8x256xbf16>
    %c0_20 = arith.constant 0 : index
    %c0_21 = arith.constant 0 : index
    %55 = vector.load %arg4[%c0_20, %c0_21] : memref<8x256xbf16, #tpu.memory_space<vmem>>, vector<8x256xbf16>
    tpu.vector_store %arg4[%c0_20, %c0_21], %54 {strides = array<i32>} : memref<8x256xbf16, #tpu.memory_space<vmem>>, vector<8x256xbf16>,
    %56 = arith.truncf %49 : vector<8x128xf32> to vector<8x128xbf16>
    %c0_22 = arith.constant 0 : index
    %c0_23 = arith.constant 0 : index
    %57 = vector.load %arg5[%c0_22, %c0_23] : memref<8x128xbf16, #tpu.memory_space<vmem>>, vector<8x128xbf16>
    tpu.vector_store %arg5[%c0_22, %c0_23], %56 {strides = array<i32>} : memref<8x128xbf16, #tpu.memory_space<vmem>>, vector<8x128xbf16>,
    return
  }
}

</mosaic_0001>

<bundles_post_ra>
// kernel: tpu_custom_call.1
= control target key start
LH: loop header
LB: loop body
LE: loop exit
PB: predicated region body
PF: predicated region fallthrough
CT: control target
= control target key end

     0   :  { %11 = vsyncpa [#allocation3], 0  ;;  %s482_s0 = inlined_call_operand.hbm [shape: f32[8,256], index: 0, kind: input, shape index: {}]   ;;  %s483_s1 = inlined_call_operand.hbm [shape: f32[8,128], index: 1, kind: input, shape index: {}]   ;;  %s484_s2 = inlined_call_operand.hbm [shape: bf16[8,256], index: 2, kind: output, shape index: {0}]   ;;  %s485_s3 = inlined_call_operand.hbm [shape: bf16[8,128], index: 3, kind: output, shape index: {1}]   ;;  %s486_s4 = inlined_call_operand.hbm [shape: bf16[8,256], index: 4, kind: output, shape index: {2}]   ;;  %s487_s5 = inlined_call_operand.hbm [shape: bf16[8,128], index: 5, kind: output, shape index: {3}]  }
   0x1   :  { %12 = vsyncpa [#allocation6], 0 }
   0x2   :  { %13 = vsyncpa [#allocation4], 0 }
   0x3   :  { %14 = vsyncpa [#allocation9], 0 }
   0x4   :  { %15 = vsyncpa [#allocation12], 0  ;;  %s367_s18 = smov [#allocation2]   ;;  %s368_s20 = smov [#allocation5]  }
   0x5   :  { %s22_s19 = sshll.u32 %s367_s18, 4  ;;  %s32_s21 = sshll.u32 %s368_s20, 4  ;;  %s23_s19 = int_to_ptr.vmem [resolvable:$true] %s22_s19  ;;  %s33_s21 = int_to_ptr.vmem [resolvable:$true] %s32_s21 }
   0x6   :  { %s225_s24 = scalar_lea.hbm %s482_s0, 256 }
   0x7   :  { %p226_p0 = scmp.ne.s32.totalorder %s482_s0, %s225_s24  ;;  %p229_p1 = scmp.lt.u32.totalorder %s225_s24, %s482_s0 }
   0x9   :  { %p231_p2 = pnand %p229_p1, %p226_p0 }
   0xb   :  { %234 = shalt.err (!%p231_p2)
}
   0xc   :  { %s235_s29 = scalar_lea.vmem %s23_s19, 256  ;;  %p240_p4 = scmp.lt.s32.totalorder %s23_s19, %s23_s19 }
   0xd   :  { %p236_p3 = scmp.ne.s32.totalorder %s23_s19, %s235_s29  ;;  %p241_p5 = scmp.lt.s32.totalorder %s235_s29, %s235_s29 }
   0xf   :  { %p242_p6 = por %p241_p5, %p240_p4 }
  0x11   :  { %p243_p7 = pnand %p242_p6, %p236_p3 }
  0x13   :  { %246 = shalt.err (!%p243_p7)
}
  0x14   :  { %25 = dma.hbm_to_vmem [thread:$0]  %s482_s0, 256, %s23_s19, [#allocation3]  }
  0x15   :  { %s247_s9 = scalar_lea.hbm %s483_s1, 128 }
  0x16   :  { %p248_p8 = scmp.ne.s32.totalorder %s483_s1, %s247_s9  ;;  %p251_p9 = scmp.lt.u32.totalorder %s247_s9, %s483_s1 }
  0x18   :  { %p253_p10 = pnand %p251_p9, %p248_p8 }
  0x1a   :  { %256 = shalt.err (!%p253_p10)
}
  0x1b   :  { %s257_s14 = scalar_lea.vmem %s33_s21, 128  ;;  %p262_p12 = scmp.lt.s32.totalorder %s33_s21, %s33_s21 }
  0x1c   :  { %p258_p11 = scmp.ne.s32.totalorder %s33_s21, %s257_s14  ;;  %p263_p13 = scmp.lt.s32.totalorder %s257_s14, %s257_s14 }
  0x1e   :  { %p264_p0 = por %p263_p13, %p262_p12 }
  0x20   :  { %p265_p1 = pnand %p264_p0, %p258_p11 }
  0x22   :  { %268 = shalt.err (!%p265_p1)
}
  0x23   :  { %35 = dma.hbm_to_vmem [thread:$0]  %s483_s1, 128, %s33_s21, [#allocation6]  }
  0x24   :  { %357 = dma.done.wait [#allocation3], 256  }
  0x25   :  { %358 = vsyncadd [#allocation3], 4294967040 }
  0x26   :  { %359 = dma.done.wait [#allocation6], 128  }
  0x27   :  { %360 = vsyncadd [#allocation6], 4294967168  ;;  %v93_v0 = vld [vmem:[#allocation5] sm:$0xff]  ;;  %v42_v1 = vld [vmem:[#allocation2] sm:$0xff]  ;;  %s369_s1 = smov [#allocation8]   ;;  %s370_s17 = smov [#allocation7]  }
  0x28   :  { %v43_v2 = vld [vmem:[#allocation2 + $0x8] sm:$0xff]  ;;  %v94_v3 = vrot.slane %v93_v0, 4  ;;  %v44_v4 = vrot.slane %v42_v1, 4  ;;  %s156_s16 = sshll.u32 %s369_s1, 4  ;;  %s146_s18 = sshll.u32 %s370_s17, 4  ;;  %s157_s16 = int_to_ptr.vmem [resolvable:$true] %s156_s16  ;;  %s427_s18 = int_to_ptr.vmem [resolvable:$true] %s146_s18 }
  0x29   :  { %v50_v5 = vrot.slane %v43_v2, 4  ;;  %s269_s19 = scalar_lea.vmem %s157_s16, 64  ;;  %p274_p3 = scmp.lt.s32.totalorder %s157_s16, %s157_s16 }
  0x2a   :  { %v95_v6 = vadd.f32 %v94_v3, %v93_v0  ;;  %v45_v7 = vadd.f32 %v44_v4, %v42_v1  ;;  %p270_p2 = scmp.ne.s32.totalorder %s157_s16, %s269_s19  ;;  %p275_p4 = scmp.lt.s32.totalorder %s269_s19, %s269_s19 }
  0x2b   :  { %v51_v8 = vadd.f32 %v50_v5, %v43_v2 }
  0x2c   :  { %v96_v9 = vrot.slane %v95_v6, 2  ;;  %v46_v10 = vrot.slane %v45_v7, 2  ;;  %p276_p5 = por %p275_p4, %p274_p3 }
  0x2d   :  { %v52_v11 = vrot.slane %v51_v8, 2 }
  0x2e   :  { %v97_v12 = vadd.f32 %v96_v9, %v95_v6  ;;  %v47_v13 = vadd.f32 %v46_v10, %v45_v7  ;;  %p277_p6 = pnand %p276_p5, %p270_p2 }
  0x2f   :  { %v53_v14 = vadd.f32 %v52_v11, %v51_v8 }
  0x30   :  { %v98_v15 = vrot.slane %v97_v12, 1  ;;  %v48_v16 = vrot.slane %v47_v13, 1 }
  0x31   :  { %v54_v17 = vrot.slane %v53_v14, 1 }
  0x32   :  { %v99_v18 = vadd.f32 %v98_v15, %v97_v12  ;;  %v49_v19 = vadd.f32 %v48_v16, %v47_v13 }
  0x33   :  { %v55_v20 = vadd.f32 %v54_v17, %v53_v14 }
  0x34   :  { %v100_v21 = vmul.f32 0.125, %v99_v18  ;;  %v57_v22 = vmul.f32 0.125, %v49_v19 }
  0x35   :  { %v58_v23 = vmul.f32 0.125, %v55_v20 }
  0x36   :  { %v101_v24 = vsub.f32 %v93_v0, %v100_v21  ;;  %v59_v25 = vsub.f32 %v42_v1, %v57_v22 }
  0x37   :  { %v60_v26 = vsub.f32 %v43_v2, %v58_v23 }
  0x38   :  { %v102_v27 = vmul.f32 %v101_v24, %v101_v24  ;;  %v61_v28 = vmul.f32 %v59_v25, %v59_v25 }
  0x39   :  { %v62_v29 = vmul.f32 %v60_v26, %v60_v26 }
  0x3a   :  { %v103_v30 = vrot.slane %v102_v27, 4  ;;  %v63_v31 = vrot.slane %v61_v28, 4 }
  0x3b   :  { %v69_v32 = vrot.slane %v62_v29, 4 }
  0x3c   :  { %v104_v33 = vadd.f32 %v103_v30, %v102_v27  ;;  %v64_v34 = vadd.f32 %v63_v31, %v61_v28 }
  0x3d   :  { %v70_v35 = vadd.f32 %v69_v32, %v62_v29 }
  0x3e   :  { %v105_v36 = vrot.slane %v104_v33, 2  ;;  %v65_v37 = vrot.slane %v64_v34, 2 }
  0x3f   :  { %v71_v38 = vrot.slane %v70_v35, 2 }
  0x40   :  { %v106_v39 = vadd.f32 %v105_v36, %v104_v33  ;;  %v66_v40 = vadd.f32 %v65_v37, %v64_v34 }
  0x41   :  { %v72_v41 = vadd.f32 %v71_v38, %v70_v35 }
  0x42   :  { %v107_v42 = vrot.slane %v106_v39, 1  ;;  %v67_v43 = vrot.slane %v66_v40, 1 }
  0x43   :  { %v73_v44 = vrot.slane %v72_v41, 1 }
  0x44   :  { %v108_v45 = vadd.f32 %v107_v42, %v106_v39  ;;  %v68_v46 = vadd.f32 %v67_v43, %v66_v40 }
  0x45   :  { %v74_v47 = vadd.f32 %v73_v44, %v72_v41 }
  0x46   :  { %v109_v48 = vmul.f32 0.125, %v108_v45  ;;  %v75_v49 = vmul.f32 0.125, %v68_v46 }
  0x47   :  { %v76_v50 = vmul.f32 0.125, %v74_v47 }
  0x48   :  { %v110_v51 = vadd.f32 1e-05, %v109_v48  ;;  %v77_v52 = vadd.f32 1e-05, %v75_v49 }
  0x49   :  { %v78_v53 = vadd.f32 1e-05, %v76_v50 }
  0x4a   :  { %207 = vrsqrt.f32 %v110_v51 }
  0x4b   :  { %209 = vrcp.f32 %v110_v51 }
  0x4c   :  { %211 = vrsqrt.f32 %v77_v52 }
  0x4d   :  { %213 = vrsqrt.f32 %v78_v53 }
  0x4e   :  { %215 = vrcp.f32 %v77_v52 }
  0x4f   :  { %217 = vrcp.f32 %v78_v53 }
  0x54   :  { %v208_v54 = vpop.eup %207 }
  0x55   :  { %v210_v55 = vpop.eup %209  ;;  %v112_v56 = vmul.f32 %v208_v54, %v101_v24 }
  0x56   :  { %v212_v57 = vpop.eup %211  ;;  %v114_v58 = vmul.f32 %v210_v55, %v109_v48 }
  0x57   :  { %v214_v59 = vpop.eup %213  ;;  %v127_v60 = vpack.c.bf16 %v112_v56, %v112_v56  ;;  %v81_v62 = vmul.f32 %v212_v57, %v59_v25 }
  0x58   :  { %v216_v61 = vpop.eup %215  ;;  %v82_v63 = vmul.f32 %v214_v59, %v60_v26  ;;  %v115_v0 = vadd.f32 1e-05, %v114_v58 }
  0x59   :  { %v218_v1 = vpop.eup %217  ;;  %128 = vst [vmem:[#allocation8] sm:$0xf] %v127_v60  ;;  %v84_v2 = vmul.f32 %v216_v61, %v75_v49 }
  0x5a   :  { %v199_v3 = vpack.c.bf16 %v82_v63, %v81_v62  ;;  %v86_v4 = vmul.f32 %v218_v1, %v76_v50  ;;  %219 = vrsqrt.f32 %v115_v0 }
  0x5b   :  { %280 = shalt.err (!%p277_p6)
}
  0x5c   :  { %s281_s22 = scalar_lea.hbm %s485_s3, 64 }
  0x5d   :  { %p282_p7 = scmp.ne.s32.totalorder %s485_s3, %s281_s22  ;;  %p285_p8 = scmp.lt.u32.totalorder %s281_s22, %s485_s3 }
  0x5f   :  { %p287_p9 = pnand %p285_p8, %p282_p7 }
  0x61   :  { %290 = shalt.err (!%p287_p9)
}
  0x62   :  { %159 = dma.vmem_to_hbm [thread:$0]  %s157_s16, 64, %s485_s3, [#allocation9]   ;;  %v87_v5 = vadd.f32 1e-05, %v84_v2  ;;  %126 = vst [vmem:[#allocation7] sm:$0xff] %v199_v3 }
  0x63   :  { %v88_v6 = vadd.f32 1e-05, %v86_v4  ;;  %s291_s29 = scalar_lea.vmem %s427_s18, 128  ;;  %p296_p11 = scmp.lt.s32.totalorder %s427_s18, %s427_s18 }
  0x64   :  { %221 = vrsqrt.f32 %v87_v5  ;;  %p292_p10 = scmp.ne.s32.totalorder %s427_s18, %s291_s29  ;;  %p297_p12 = scmp.lt.s32.totalorder %s291_s29, %s291_s29 }
  0x66   :  { %p298_p13 = por %p297_p12, %p296_p11 }
  0x68   :  { %p299_p0 = pnand %p298_p13, %p292_p10 }
  0x6a   :  { %302 = shalt.err (!%p299_p0)
}
  0x6b   :  { %s303_s7 = scalar_lea.hbm %s484_s2, 128 }
  0x6c   :  { %p304_p1 = scmp.ne.s32.totalorder %s484_s2, %s303_s7  ;;  %p307_p2 = scmp.lt.u32.totalorder %s303_s7, %s484_s2 }
  0x6e   :  { %p309_p3 = pnand %p307_p2, %p304_p1 }
  0x70   :  { %312 = shalt.err (!%p309_p3)
}
  0x71   :  { %149 = dma.vmem_to_hbm [thread:$0]  %s427_s18, 128, %s484_s2, [#allocation4]   ;;  %223 = vrsqrt.f32 %v88_v6  ;;  %v220_v7 = vpop.eup %219 }
  0x72   :  { %s371_s13 = smov [#allocation11]   ;;  %v117_v8 = vmul.f32 %v220_v7, %v112_v56  ;;  %v222_v9 = vpop.eup %221  ;;  %s372_s0 = smov [#allocation10]  }
  0x73   :  { %s176_s14 = sshll.u32 %s371_s13, 4  ;;  %v91_v12 = vmul.f32 %v222_v9, %v81_v62  ;;  %s166_s15 = sshll.u32 %s372_s0, 4  ;;  %s177_s14 = int_to_ptr.vmem [resolvable:$true] %s176_s14  ;;  %s167_s15 = int_to_ptr.vmem [resolvable:$true] %s166_s15 }
  0x74   :  { %v138_v10 = vpack.c.bf16 %v117_v8, %v117_v8  ;;  %s313_s1 = scalar_lea.vmem %s177_s14, 64  ;;  %p318_p5 = scmp.lt.s32.totalorder %s177_s14, %s177_s14 }
  0x75   :  { %p314_p4 = scmp.ne.s32.totalorder %s177_s14, %s313_s1  ;;  %p319_p6 = scmp.lt.s32.totalorder %s313_s1, %s313_s1 }
  0x76   :  { %139 = vst [vmem:[#allocation11] sm:$0xf] %v138_v10 }
  0x77   :  { %p320_p7 = por %p319_p6, %p318_p5 }
  0x79   :  { %p321_p8 = pnand %p320_p7, %p314_p4 }
  0x7b   :  { %v224_v11 = vpop.eup %223 }
  0x7c   :  { %v92_v13 = vmul.f32 %v224_v11, %v82_v63 }
  0x7d   :  { %324 = shalt.err (!%p321_p8)
}
  0x7e   :  { %s325_s17 = scalar_lea.hbm %s487_s5, 64 }
  0x7f   :  { %p326_p9 = scmp.ne.s32.totalorder %s487_s5, %s325_s17  ;;  %p329_p10 = scmp.lt.u32.totalorder %s325_s17, %s487_s5 }
  0x81   :  { %p331_p11 = pnand %p329_p10, %p326_p9 }
  0x83   :  { %334 = shalt.err (!%p331_p11)
}
  0x84   :  { %179 = dma.vmem_to_hbm [thread:$0]  %s177_s14, 64, %s487_s5, [#allocation12]   ;;  %v200_v14 = vpack.c.bf16 %v92_v13, %v91_v12 }
  0x85   :  { %s335_s24 = scalar_lea.vmem %s167_s15, 128  ;;  %p340_p13 = scmp.lt.s32.totalorder %s167_s15, %s167_s15 }
  0x86   :  { %137 = vst [vmem:[#allocation10] sm:$0xff] %v200_v14  ;;  %p336_p12 = scmp.ne.s32.totalorder %s167_s15, %s335_s24  ;;  %p341_p0 = scmp.lt.s32.totalorder %s335_s24, %s335_s24 }
  0x88   :  { %p342_p1 = por %p341_p0, %p340_p13 }
  0x8a   :  { %p343_p2 = pnand %p342_p1, %p336_p12 }
  0x8c   :  { %346 = shalt.err (!%p343_p2)
}
  0x8d   :  { %s347_s27 = scalar_lea.hbm %s486_s4, 128 }
  0x8e   :  { %p348_p3 = scmp.ne.s32.totalorder %s486_s4, %s347_s27  ;;  %p351_p4 = scmp.lt.u32.totalorder %s347_s27, %s486_s4 }
  0x90   :  { %p353_p5 = pnand %p351_p4, %p348_p3 }
  0x92   :  { %356 = shalt.err (!%p353_p5)
}
  0x93   :  { %169 = dma.vmem_to_hbm [thread:$0]  %s167_s15, 128, %s486_s4, [#allocation9]  }
  0x94   :  { %361 = dma.done.wait [#allocation4], 128  }
  0x95   :  { %362 = vsyncadd [#allocation4], 4294967168 }
  0x96   :  { %363 = dma.done.wait [#allocation9], 192  }
  0x97   :  { %364 = vsyncadd [#allocation9], 4294967104 }
  0x98   :  { %365 = dma.done.wait [#allocation12], 64  }
  0x99   :  { %366 = vsyncadd [#allocation12], 4294967232 }
  0x9a   :  { %192 = vsyncpa [#allocation3], 1 }
  0x9b   :  { %193 = vsyncpa [#allocation6], 1 }
  0x9c   :  { %194 = vsyncpa [#allocation4], 1 }
  0x9d   :  { %195 = vsyncpa [#allocation9], 1 }
  0x9e   :  { %196 = vsyncpa [#allocation12], 1 }

</bundles_post_ra>
